<compile_context>
chip_gen: v7x
topology: tpu7x:2x2x1
jax: 0.10.0
libtpu: 0.0.40
codegen_flags: <defaults>
</compile_context>

<pallas_src>
import functools

import jax
import jax.numpy as jnp
from jax.experimental import pallas as pl
from jax.experimental.pallas import tpu as pltpu


def _frb_kernel(xl_ref, xh_ref, w1l_ref, w1h_ref, b1_ref, w2_ref, b2_ref,
                out_ref, *, inv_hw):
    """One grid step processes `tb` whole batch items.

    xl_ref/out_ref: (tb, C1, HW)   xh_ref: (tb, C2, HW)
    w1l_ref: (C1, C2)  w1h_ref: (C2, C2)  b1_ref: (1, C2)
    w2_ref : (C2, C2)  b2_ref : (1, C2)
    """
    f32 = jnp.float32
    xl = xl_ref[...]
    xh = xh_ref[...]

    # Global average pool: lane-axis reduction, f32 accumulate, true-HW divide.
    zl = jnp.sum(xl.astype(f32), axis=-1) * inv_hw          # (tb, C1)
    zh = jnp.sum(xh.astype(f32), axis=-1) * inv_hw          # (tb, C2)

    # fc1 -> ReLU -> fc2 -> sigmoid as tiny MXU matmuls (MXU is otherwise idle).
    h = (jnp.dot(zl, w1l_ref[...], preferred_element_type=f32)
         + jnp.dot(zh, w1h_ref[...], preferred_element_type=f32)
         + b1_ref[...])                                      # (tb, C2)
    h = jnp.maximum(h, 0.0)
    o = jnp.dot(h, w2_ref[...], preferred_element_type=f32) + b2_ref[...]
    gate = jax.nn.sigmoid(o)                                 # (tb, C2) == (tb, C1)

    # Gate broadcasts over the HW lane axis; single dense store.
    out_ref[...] = (xl.astype(f32) * gate[:, :, None]).astype(out_ref.dtype)


def _vmem_limits():
    """Returns (physical VMEM bytes, scoped limit we request). Generation-aware."""
    try:
        phys = int(pltpu.get_tpu_info().vmem_capacity_bytes)
        if phys < 16 * 1024 * 1024:
            phys = 64 * 1024 * 1024
    except Exception:
        phys = 64 * 1024 * 1024            # conservative default = v7x (64 MiB/TC)
    limit = (phys * 3) // 4                # ~48 MiB on v7x, ~96 MiB on v5e/v6e
    return phys, limit


def _pick_batch_tile(batch, c1, c2, hw, itemsize, vmem_limit, param_bytes):
    """Largest divisor of `batch` whose double-buffered streamed blocks fit the
    VMEM budget; prefer >= 2 grid steps for pipelining / v7x 2-TC sharding."""

    def step_bytes(tb):
        # xl block + out block (C1 rows each) + xh block, streamed each step.
        return (2 * c1 + c2) * tb * hw * itemsize

    headroom = 4 * 1024 * 1024
    budget = (vmem_limit - 2 * param_bytes - headroom) // 2   # inputs/outputs are double-buffered
    budget = max(budget, 1 * 1024 * 1024)

    divisors = [d for d in range(1, batch + 1) if batch % d == 0]
    fitting = [d for d in divisors if step_bytes(d) <= budget]
    if not fitting:
        # Even a single batch item exceeds the budget.
        # TODO(synk): HW-tiled two-pass path for per-item slabs that cannot be
        # VMEM-resident; fall back to the smallest legal tile for now.
        return 1
    tb = max(fitting)                      # largest tile that fits -> fewest, biggest DMAs
    if tb == batch and batch > 1:
        # Keep at least 2 grid steps (DMA/compute overlap + megacore sharding).
        smaller = [d for d in fitting if d < batch]
        if smaller:
            tb = max(smaller)
    return tb


def frb_forward(xl, xh, w1, b1, w2, b2):
    """xl: (B, C1, H, W), xh: (B, C2, H, W) (NCHW, f32 or bf16).
    w1: (C1+C2, C2) (transposed vs. torch Linear), b1: (C2,), w2: (C2, C2), b2: (C2,)."""
    B, C1, H, W = xl.shape
    Bh, C2, Hh, Wh = xh.shape
    assert Bh == B and (H, W) == (Hh, Wh), "xl and xh must share batch/spatial dims"
    assert C1 == C2, "original module's view(-1, C1, H, W) implies in_planes1 == in_planes2"
    HW = H * W
    f32 = jnp.float32

    # Streamed activations keep their native dtype (bf16 halves HBM traffic).
    xl3 = xl.reshape(B, C1, HW)            # contiguous collapse: free reshape
    xh3 = xh.reshape(B, C2, HW)
    itemsize = max(jnp.dtype(xl.dtype).itemsize, jnp.dtype(xh.dtype).itemsize)

    # Small resident parameters, un-replicated (footprint independent of tile size).
    w1l = w1[:C1].astype(f32)              # (C1, C2)
    w1h = w1[C1:].astype(f32)              # (C2, C2)
    b1r = b1.reshape(1, C2).astype(f32)
    w2f = w2.astype(f32)                   # (C2, C2)
    b2r = b2.reshape(1, C2).astype(f32)
    param_bytes = 4 * (w1l.size + w1h.size + b1r.size + w2f.size + b2r.size)

    phys_vmem, vmem_limit = _vmem_limits()
    tb = _pick_batch_tile(B, C1, C2, HW, itemsize, vmem_limit, param_bytes)
    grid = (B // tb,)

    # Make the requested scoped VMEM cover what we actually use (capped at physical).
    step_bytes = (2 * C1 + C2) * tb * HW * itemsize
    vmem_needed = 2 * step_bytes + 2 * param_bytes + 4 * 1024 * 1024
    vmem_limit = int(min(max(vmem_limit, vmem_needed), phys_vmem - 2 * 1024 * 1024))

    kernel = functools.partial(_frb_kernel, inv_hw=float(1.0 / HW))

    cost = pl.CostEstimate(
        flops=int(B * (C1 + C2) * HW            # pooling adds
                  + B * C1 * HW                 # gating multiply
                  + 2 * B * (C1 + C2) * C2      # fc1
                  + 2 * B * C2 * C2),           # fc2
        transcendentals=int(B * C2),            # sigmoid
        bytes_accessed=int(itemsize * (2 * B * C1 * HW + B * C2 * HW) + param_bytes),
    )

    out3 = pl.pallas_call(
        kernel,
        out_shape=jax.ShapeDtypeStruct((B, C1, HW), xl.dtype),
        grid=grid,
        in_specs=[
            pl.BlockSpec((tb, C1, HW), lambda i: (i, 0, 0)),   # xl: streamed
            pl.BlockSpec((tb, C2, HW), lambda i: (i, 0, 0)),   # xh: streamed
            pl.BlockSpec((C1, C2), lambda i: (0, 0)),          # params: resident
            pl.BlockSpec((C2, C2), lambda i: (0, 0)),
            pl.BlockSpec((1, C2), lambda i: (0, 0)),
            pl.BlockSpec((C2, C2), lambda i: (0, 0)),
            pl.BlockSpec((1, C2), lambda i: (0, 0)),
        ],
        out_specs=pl.BlockSpec((tb, C1, HW), lambda i: (i, 0, 0)),
        compiler_params=pltpu.CompilerParams(
            dimension_semantics=("parallel",),
            vmem_limit_bytes=vmem_limit,
        ),
        cost_estimate=cost,
    )(xl3, xh3, w1l, w1h, b1r, w2f, b2r)

    return out3.reshape(B, C1, H, W)


def frb_reference(xl, xh, w1, b1, w2, b2):
    """Pure-JAX reference mirroring the PyTorch forward."""
    xc = jnp.concatenate([xl, xh], axis=1)
    zc = jnp.mean(xc, axis=(2, 3))               # (B, C1+C2)
    h = jnp.maximum(zc @ w1 + b1, 0.0)
    gate = jax.nn.sigmoid(h @ w2 + b2)           # (B, C2)
    return gate[:, :, None, None] * xl


if __name__ == "__main__":
    B, C1, C2, H, W = 2, 4, 4, 16, 16

    key = jax.random.PRNGKey(0)
    k_xl, k_xh, k_w1, k_b1, k_w2, k_b2 = jax.random.split(key, 6)

    xl = jax.random.normal(k_xl, (B, C1, H, W), dtype=jnp.float32)
    xh = jax.random.normal(k_xh, (B, C2, H, W), dtype=jnp.float32)

    # Deterministic synthetic parameters (nn.Linear-style fan-in scaling).
    fan1 = C1 + C2
    w1 = jax.random.uniform(k_w1, (C1 + C2, C2), jnp.float32, -1.0, 1.0) / jnp.sqrt(fan1)
    b1 = jax.random.uniform(k_b1, (C2,), jnp.float32, -1.0, 1.0) / jnp.sqrt(fan1)
    w2 = jax.random.uniform(k_w2, (C2, C2), jnp.float32, -1.0, 1.0) / jnp.sqrt(C2)
    b2 = jax.random.uniform(k_b2, (C2,), jnp.float32, -1.0, 1.0) / jnp.sqrt(C2)

    out = jax.block_until_ready(frb_forward(xl, xh, w1, b1, w2, b2))

    ref = frb_reference(xl, xh, w1, b1, w2, b2)
    assert out.shape == (B, C1, H, W)
    assert jnp.allclose(out, ref, atol=1e-5, rtol=1e-5), "mismatch vs reference"

    print("KERNEL_OK")
</pallas_src>

<mosaic_0001>
module attributes {stable_mosaic.version = 11 : i64} {
  func.func @_frb_kernel(%arg0: i32, %arg1: memref<1x4x256xf32, #tpu.memory_space<vmem>>, %arg2: memref<1x4x256xf32, #tpu.memory_space<vmem>>, %arg3: memref<4x4xf32, #tpu.memory_space<vmem>>, %arg4: memref<4x4xf32, #tpu.memory_space<vmem>>, %arg5: memref<1x4xf32, #tpu.memory_space<vmem>>, %arg6: memref<4x4xf32, #tpu.memory_space<vmem>>, %arg7: memref<1x4xf32, #tpu.memory_space<vmem>>, %arg8: memref<1x4x256xf32, #tpu.memory_space<vmem>>) attributes {dimension_semantics = [#tpu.dimension_semantics<parallel>], iteration_bounds = array<i64: 2>, scalar_prefetch = 0 : i64, scratch_operands = 0 : i64, tpu.core_type = #tpu.core_type<tc>, window_params = [{transform_indices = @transform_0, window_bounds = array<i64: 1, 4, 256>}, {transform_indices = @transform_1, window_bounds = array<i64: 1, 4, 256>}, {pipeline_mode = #tpu.pipeline_mode<synchronous>, transform_indices = @transform_2, window_bounds = array<i64: 4, 4>}, {pipeline_mode = #tpu.pipeline_mode<synchronous>, transform_indices = @transform_3, window_bounds = array<i64: 4, 4>}, {pipeline_mode = #tpu.pipeline_mode<synchronous>, transform_indices = @transform_4, window_bounds = array<i64: 1, 4>}, {pipeline_mode = #tpu.pipeline_mode<synchronous>, transform_indices = @transform_5, window_bounds = array<i64: 4, 4>}, {pipeline_mode = #tpu.pipeline_mode<synchronous>, transform_indices = @transform_6, window_bounds = array<i64: 1, 4>}, {transform_indices = @transform_7, window_bounds = array<i64: 1, 4, 256>}]} {
    %c0 = arith.constant 0 : index
    %c0_0 = arith.constant 0 : index
    %c0_1 = arith.constant 0 : index
    %0 = vector.load %arg1[%c0, %c0_0, %c0_1] : memref<1x4x256xf32, #tpu.memory_space<vmem>>, vector<1x4x256xf32>
    %c0_2 = arith.constant 0 : index
    %c0_3 = arith.constant 0 : index
    %c0_4 = arith.constant 0 : index
    %1 = vector.load %arg2[%c0_2, %c0_3, %c0_4] : memref<1x4x256xf32, #tpu.memory_space<vmem>>, vector<1x4x256xf32>
    %cst = arith.constant dense<0.000000e+00> : vector<1x4xf32>
    %2 = vector.multi_reduction <add>, %0, %cst [2] : vector<1x4x256xf32> to vector<1x4xf32>
    %cst_5 = arith.constant 3.906250e-03 : f32
    %3 = vector.broadcast %cst_5 : f32 to vector<1x4xf32>
    %4 = arith.mulf %2, %3 : vector<1x4xf32>
    %cst_6 = arith.constant dense<0.000000e+00> : vector<1x4xf32>
    %5 = vector.multi_reduction <add>, %1, %cst_6 [2] : vector<1x4x256xf32> to vector<1x4xf32>
    %cst_7 = arith.constant 3.906250e-03 : f32
    %6 = vector.broadcast %cst_7 : f32 to vector<1x4xf32>
    %7 = arith.mulf %5, %6 : vector<1x4xf32>
    %c0_8 = arith.constant 0 : index
    %c0_9 = arith.constant 0 : index
    %8 = vector.load %arg3[%c0_8, %c0_9] : memref<4x4xf32, #tpu.memory_space<vmem>>, vector<4x4xf32>
    %cst_10 = arith.constant dense<0.000000e+00> : vector<1x4xf32>
    %9 = tpu.matmul %4, %8, %cst_10 {dimension_numbers = #tpu.dot_dimension_numbers<[1], [0], [0], [1], [0, 0, 1, 1], [], []>} : vector<1x4xf32>, vector<4x4xf32>, vector<1x4xf32> -> vector<1x4xf32>
    %c0_11 = arith.constant 0 : index
    %c0_12 = arith.constant 0 : index
    %10 = vector.load %arg4[%c0_11, %c0_12] : memref<4x4xf32, #tpu.memory_space<vmem>>, vector<4x4xf32>
    %cst_13 = arith.constant dense<0.000000e+00> : vector<1x4xf32>
    %11 = tpu.matmul %7, %10, %cst_13 {dimension_numbers = #tpu.dot_dimension_numbers<[1], [0], [0], [1], [0, 0, 1, 1], [], []>} : vector<1x4xf32>, vector<4x4xf32>, vector<1x4xf32> -> vector<1x4xf32>
    %12 = arith.addf %9, %11 : vector<1x4xf32>
    %c0_14 = arith.constant 0 : index
    %c0_15 = arith.constant 0 : index
    %13 = vector.load %arg5[%c0_14, %c0_15] : memref<1x4xf32, #tpu.memory_space<vmem>>, vector<1x4xf32>
    %14 = arith.addf %12, %13 : vector<1x4xf32>
    %cst_16 = arith.constant 0.000000e+00 : f32
    %15 = vector.broadcast %cst_16 : f32 to vector<1x4xf32>
    %16 = arith.maximumf %14, %15 : vector<1x4xf32>
    %c0_17 = arith.constant 0 : index
    %c0_18 = arith.constant 0 : index
    %17 = vector.load %arg6[%c0_17, %c0_18] : memref<4x4xf32, #tpu.memory_space<vmem>>, vector<4x4xf32>
    %cst_19 = arith.constant dense<0.000000e+00> : vector<1x4xf32>
    %18 = tpu.matmul %16, %17, %cst_19 {dimension_numbers = #tpu.dot_dimension_numbers<[1], [0], [0], [1], [0, 0, 1, 1], [], []>} : vector<1x4xf32>, vector<4x4xf32>, vector<1x4xf32> -> vector<1x4xf32>
    %c0_20 = arith.constant 0 : index
    %c0_21 = arith.constant 0 : index
    %19 = vector.load %arg7[%c0_20, %c0_21] : memref<1x4xf32, #tpu.memory_space<vmem>>, vector<1x4xf32>
    %20 = arith.addf %18, %19 : vector<1x4xf32>
    %21 = arith.negf %20 : vector<1x4xf32>
    %22 = math.exp %21 : vector<1x4xf32>
    %cst_22 = arith.constant 1.000000e+00 : f32
    %23 = vector.broadcast %cst_22 : f32 to vector<1x4xf32>
    %24 = arith.addf %23, %22 : vector<1x4xf32>
    %25 = arith.divf %23, %24 : vector<1x4xf32>
    %26 = vector.shape_cast %25 : vector<1x4xf32> to vector<1x4x1xf32>
    %27 = vector.broadcast %26 : vector<1x4x1xf32> to vector<1x4x256xf32>
    %28 = arith.mulf %0, %27 : vector<1x4x256xf32>
    %c0_23 = arith.constant 0 : index
    %c0_24 = arith.constant 0 : index
    %c0_25 = arith.constant 0 : index
    %29 = vector.load %arg8[%c0_23, %c0_24, %c0_25] : memref<1x4x256xf32, #tpu.memory_space<vmem>>, vector<1x4x256xf32>
    tpu.vector_store %arg8[%c0_23, %c0_24, %c0_25], %28 {strides = array<i32>} : memref<1x4x256xf32, #tpu.memory_space<vmem>>, vector<1x4x256xf32>,
    return
  }
  func.func @transform_0(%arg0: i32) -> (i32, i32, i32) {
    %c0_i32 = arith.constant 0 : i32
    %c0_i32_0 = arith.constant 0 : i32
    %c0_i32_1 = arith.constant 0 : i32
    return %arg0, %c0_i32, %c0_i32_0 : i32, i32, i32
  }
  func.func @transform_1(%arg0: i32) -> (i32, i32, i32) {
    %c0_i32 = arith.constant 0 : i32
    %c0_i32_0 = arith.constant 0 : i32
    %c0_i32_1 = arith.constant 0 : i32
    return %arg0, %c0_i32, %c0_i32_0 : i32, i32, i32
  }
  func.func @transform_2(%arg0: i32) -> (i32, i32) {
    %c0_i32 = arith.constant 0 : i32
    %c0_i32_0 = arith.constant 0 : i32
    %c0_i32_1 = arith.constant 0 : i32
    return %c0_i32, %c0_i32_0 : i32, i32
  }
  func.func @transform_3(%arg0: i32) -> (i32, i32) {
    %c0_i32 = arith.constant 0 : i32
    %c0_i32_0 = arith.constant 0 : i32
    %c0_i32_1 = arith.constant 0 : i32
    return %c0_i32, %c0_i32_0 : i32, i32
  }
  func.func @transform_4(%arg0: i32) -> (i32, i32) {
    %c0_i32 = arith.constant 0 : i32
    %c0_i32_0 = arith.constant 0 : i32
    %c0_i32_1 = arith.constant 0 : i32
    return %c0_i32, %c0_i32_0 : i32, i32
  }
  func.func @transform_5(%arg0: i32) -> (i32, i32) {
    %c0_i32 = arith.constant 0 : i32
    %c0_i32_0 = arith.constant 0 : i32
    %c0_i32_1 = arith.constant 0 : i32
    return %c0_i32, %c0_i32_0 : i32, i32
  }
  func.func @transform_6(%arg0: i32) -> (i32, i32) {
    %c0_i32 = arith.constant 0 : i32
    %c0_i32_0 = arith.constant 0 : i32
    %c0_i32_1 = arith.constant 0 : i32
    return %c0_i32, %c0_i32_0 : i32, i32
  }
  func.func @transform_7(%arg0: i32) -> (i32, i32, i32) {
    %c0_i32 = arith.constant 0 : i32
    %c0_i32_0 = arith.constant 0 : i32
    %c0_i32_1 = arith.constant 0 : i32
    return %arg0, %c0_i32, %c0_i32_0 : i32, i32, i32
  }
}

</mosaic_0001>

<bundles_post_ra>
// kernel: tpu_custom_call.1
= control target key start
LH: loop header
LB: loop body
LE: loop exit
PB: predicated region body
PF: predicated region fallthrough
CT: control target
= control target key end

     0   :  { %s1267_s0 = inlined_call_operand.hbm [shape: f32[2,4,256], index: 0, kind: input, shape index: {}]   ;;  %s1268_s1 = inlined_call_operand.hbm [shape: f32[2,4,256], index: 1, kind: input, shape index: {}]   ;;  %s1269_s2 = inlined_call_operand.vmem [shape: f32[4,4], index: 2, kind: input, shape index: {}]   ;;  %s1270_s3 = inlined_call_operand.vmem [shape: f32[4,4], index: 3, kind: input, shape index: {}]   ;;  %s1271_s4 = inlined_call_operand.vmem [shape: f32[1,4], index: 4, kind: input, shape index: {}]   ;;  %s1272_s5 = inlined_call_operand.vmem [shape: f32[4,4], index: 5, kind: input, shape index: {}]   ;;  %s1273_s6 = inlined_call_operand.vmem [shape: f32[1,4], index: 6, kind: input, shape index: {}]   ;;  %s1274_s7 = inlined_call_operand.hbm [shape: f32[2,4,256], index: 7, kind: output, shape index: {}]  }
   0x1   :  { %1278 = sst [smem:[#allocation11_spill]] %s1267_s0 }
   0x2   :  { %12 = vsyncpa [#allocation3], 0 }
   0x3   :  { %14 = vsyncpa [#allocation3 + $0x1], 0 }
   0x4   :  { %15 = vsyncpa [#allocation6], 0 }
   0x5   :  { %17 = vsyncpa [#allocation6 + $0x1], 0 }
   0x6   :  { %18 = vsyncpa [#allocation4], 0 }
   0x7   :  { %20 = vsyncpa [#allocation4 + $0x1], 0  ;;  %s1019_s24 = smov 0   ;;  %s1021_s25 = smov 0  }
   0x8   :  { %s1023_s26 = smov 0   ;;  %s1025_s27 = smov 0  }
   0x9 LB: > { %s1040_s28 = sadd.s32 4294967295, %s971_s27   ;;  %s732_s29 = sadd.s32 4294967294, %s971_s27   ;;  %s971_s27 = sphi %s1025_s27, %s1297_s27   ;;  %s967_s26 = sphi %s1023_s26, %s1296_s26   ;;  %s963_s25 = sphi %s1021_s25, %s1295_s25   ;;  %s959_s24 = sphi %s1019_s24, %s1294_s24  }
   0xa   : > { %s1044_s30 = sadd.s32 1, %s971_s27   ;;  %s33_s8 = sadd.s32 1, %s967_s26 }
   0xb   : > { %s30_s9 = ssub.s32 %s971_s27, %s1044_s30  ;;  %p40_p0 = scmp.ne.s32.totalorder %s967_s26, %s963_s25 }
   0xc   : > { %p31_p1 = scmp.eq.s32.totalorder %s30_s9, 0  ;;  %p41_p2 = scmp.eq.s32.totalorder %s971_s27, 0 }
   0xd   : > { %p46_p3 = scmp.ne.s32.totalorder %s963_s25, %s959_s24  ;;  %p47_p4 = scmp.eq.s32.totalorder %s1040_s28, 0 }
   0xe   : > { %s1056_s10 = scalar_select %p31_p1, %s967_s26, %s33_s8  }
   0xf   : > { %p1058_p5 = por %p41_p2, %p40_p0  ;;  %p1062_p6 = por %p47_p4, %p46_p3 }
  0x10   : > { %p201_p7 = scmp.eq.s32.totalorder %s1040_s28, 1  ;;  %p207_p8 = scmp.eq.s32.totalorder %s732_s29, 1 }
  0x11   : > { %s1280_s12 = scalar_select %p1062_p6, 1, 0 }
  0x12   : > { %p798_p10 = scmp.lt.s32.totalorder %s971_s27, 2  ;;  %p1069_p11 = por %p201_p7, %p40_p0 }
  0x13   : > { %p1073_p12 = por %p207_p8, %p46_p3  ;;  %s1078_s15 = sand.u32 1, %s967_s26  }
  0x14   : > { %s1281_s13 = scalar_select %p1069_p11, 1, 0 }
  0x15   : > { %s1282_s14 = scalar_select %p1073_p12, 1, 0 }
  0x16   : > { %s757_s16 = sshll.u32 %s971_s27, 7  ;;  %s1275_s17 = sshll.u32 %s1078_s15, 3 }
  0x17   : > { %s1283_s0 = sld [smem:[#allocation11_spill]]  ;;  %s246_s21 = scalar_lea.vmem [#allocation2], %s1275_s17 }
  0x18   : > { %s254_s22 = sshll.u32 %s246_s21, 4  ;;  %p1093_p13 = pnand %p798_p10, %p1058_p5  ;;  %s1097_s22 = int_to_ptr.vmem [resolvable:$true] %s254_s22 }
  0x19   : > { %s243_s29 = scalar_lea.sflag [#allocation3], %s1078_s15 }
  0x1a   : > { %p843_p3 = pneg %p1093_p13 }
  0x1d   : > { %s1087_s20 = scalar_lea.hbm %s1283_s0, %s757_s16  ;;  %s846_s18 = scalar_lea.hbm %s1283_s0, 256 }
  0x1e   : > { %s841_s8 = scalar_lea.hbm %s1087_s20, 128  ;;  %p847_p5 = scmp.lt.u32.totalorder %s1087_s20, %s1283_s0 }
  0x1f   : > { %p842_p2 = scmp.ne.s32.totalorder %s1087_s20, %s841_s8  ;;  %p848_p8 = scmp.lt.u32.totalorder %s846_s18, %s841_s8 }
  0x20   : > { %p850_p9 = scmp.lt.u32.totalorder %s841_s8, %s1087_s20 }
  0x21   : > { %p844_p4 = pnand %p843_p3, %p842_p2  ;;  %p849_p10 = por %p848_p8, %p847_p5 }
  0x23   : > { %p845_p7 = pneg %p844_p4  ;;  %p851_p0 = por %p850_p9, %p849_p10 }
  0x25   : > { %p852_p1 = pnand %p851_p0, %p845_p7 }
  0x27   : > { %855 = shalt.err (!%p852_p1)
}
  0x28   : > { %s856_s17 = scalar_lea.vmem %s1097_s22, 128  ;;  %s973_s9 = smov [#allocation2]  }
  0x29   : > { %p857_p2 = scmp.ne.s32.totalorder %s1097_s22, %s856_s17  ;;  %s861_s11 = sshll.u32 %s973_s9, 4  ;;  %s862_s11 = int_to_ptr.vmem [resolvable:$false] %s861_s11 }
  0x2a   : > { %s863_s19 = scalar_lea.vmem %s862_s11, 256  ;;  %p864_p11 = scmp.lt.s32.totalorder %s1097_s22, %s862_s11 }
  0x2b   : > { %p859_p4 = pnand %p857_p2, %p843_p3  ;;  %p865_p5 = scmp.lt.s32.totalorder %s863_s19, %s856_s17 }
  0x2d   : > { %p860_p12 = pneg %p859_p4  ;;  %p866_p8 = por %p865_p5, %p864_p11 }
  0x2f   : > { %p867_p9 = pnand %p866_p8, %p860_p12 }
  0x31   : > { %870 = shalt.err (!%p867_p9)
}
  0x32   : > { %790 = dma.hbm_to_vmem [thread:$0]  (!%p1093_p13), %s1087_s20, 128, %s1097_s22, %s243_s29  }
  0x33   : > { %p1285_p0 = scmp.lt.s32.totalorder %s971_s27, 3  ;;  %p1286_p1 = scmp.ge.s32.totalorder %s971_s27, 1 }
  0x34   : > { %s1140_s21 = scalar_lea.hbm %s1268_s1, %s757_s16  ;;  %s1288_s9 = sshll.u32 %s1078_s15, 3 }
  0x35   : > { %p1131_p7 = pnand %p1286_p1, %p1285_p0  ;;  %s265_s11 = scalar_lea.vmem [#allocation5], %s1288_s9 }
  0x36   : > { %s273_s19 = sshll.u32 %s265_s11, 4  ;;  %s262_s20 = scalar_lea.sflag [#allocation6], %s1078_s15  ;;  %s274_s19 = int_to_ptr.vmem [resolvable:$true] %s273_s19 }
  0x37   : > { %s1287_s8 = scalar_select %p1131_p7, 1, 0 }
  0x38   : > { %s871_s22 = scalar_lea.hbm %s1140_s21, 128  ;;  %s876_s16 = scalar_lea.hbm %s1268_s1, 256 }
  0x39   : > { %p872_p11 = scmp.ne.s32.totalorder %s1140_s21, %s871_s22  ;;  %p877_p2 = scmp.lt.u32.totalorder %s1140_s21, %s1268_s1 }
  0x3a   : > { %p878_p4 = scmp.lt.u32.totalorder %s876_s16, %s871_s22  ;;  %p880_p8 = scmp.lt.u32.totalorder %s871_s22, %s1140_s21 }
  0x3b   : > { %p874_p12 = pnand %p872_p11, %p843_p3 }
  0x3c   : > { %p879_p5 = por %p878_p4, %p877_p2 }
  0x3d   : > { %p875_p10 = pneg %p874_p12 }
  0x3e   : > { %p881_p9 = por %p880_p8, %p879_p5 }
  0x40   : > { %p882_p0 = pnand %p881_p9, %p875_p10 }
  0x42   : > { %885 = shalt.err (!%p882_p0)
}
  0x43   : > { %s886_s15 = scalar_lea.vmem %s274_s19, 128  ;;  %s974_s9 = smov [#allocation5]  }
  0x44   : > { %p887_p1 = scmp.ne.s32.totalorder %s274_s19, %s886_s15  ;;  %s891_s0 = sshll.u32 %s974_s9, 4  ;;  %s892_s0 = int_to_ptr.vmem [resolvable:$false] %s891_s0 }
  0x45   : > { %s893_s11 = scalar_lea.vmem %s892_s0, 256  ;;  %p894_p6 = scmp.lt.s32.totalorder %s274_s19, %s892_s0 }
  0x46   : > { %p889_p11 = pnand %p887_p1, %p843_p3  ;;  %p895_p7 = scmp.lt.s32.totalorder %s893_s11, %s886_s15 }
  0x48   : > { %p890_p12 = pneg %p889_p11  ;;  %p896_p2 = por %p895_p7, %p894_p6 }
  0x4a   : > { %p897_p4 = pnand %p896_p2, %p890_p12 }
  0x4c   : > { %900 = shalt.err (!%p897_p4)
}
  0x4d   : > { %793 = dma.hbm_to_vmem [thread:$0]  (!%p1093_p13), %s1140_s21, 128, %s274_s19, %s262_s20  }
  0x4e   : > { %p1289_p10 = scmp.ne.s32.totalorder %s1287_s8, 0 }
  0x4f   : > { %s1167_s22 = sand.u32 (!%p1289_p10), 1, %s963_s25   ;;  %p1290_p6 = scmp.ne.s32.totalorder (!%p1289_p10), %s1280_s12, 0 }
  0x50   : > { %282 = sbr.rel (%p1289_p10) target bundleno = 839 (0x347), region = 48  ;;  %s1170_s29 = sshll.u32 (!%p1289_p10), %s1167_s22, 3 }
  0x51   : > { %s285_s16 = scalar_lea.sflag (!%p1289_p10), [#allocation3], %s1167_s22  ;;  %s288_s17 = scalar_lea.vmem (!%p1289_p10), [#allocation2], %s1170_s29 }
  0x57   : > { %946 = dma.done.wait (%p1290_p6), %s285_s16, 128  }
  0x58   : > { %948 = vsyncadd (%p1290_p6), %s285_s16, 4294967168  ;;  %s294_s23 = scalar_lea.sflag [#allocation6], %s1167_s22  ;;  %s297_s8 = scalar_lea.vmem [#allocation5], %s1170_s29 }
  0x59   : > { %950 = dma.done.wait (%p1290_p6), %s294_s23, 128  }
  0x5a   : > { %952 = vsyncadd (%p1290_p6), %s294_s23, 4294967168  ;;  %vm338_vm0 = vcmask 1043456   ;;  %v1184_v0 = vld [vmem:[%s288_s17] sm:$0xff]  ;;  %v334_v1 = vld [vmem:[%s297_s8] sm:$0xff]  ;;  %v975_v10 = vmov 0.0   ;;  %vm976_vm1 = vmmov 0   ;;  %v357_v13 = vlaneseq }
  0x5b   : > { %v336_v2 = vcombine.high %v1184_v0, %v1184_v0  ;;  %v339_v3 = vsel %vm338_vm0, %v1184_v0, 0.0  ;;  %v346_v4 = vcombine.high %v334_v1, %v334_v1  ;;  %v348_v6 = vsel %vm338_vm0, %v334_v1, 0.0  ;;  %771 = vmatprep.subr.mxu1 %v975_v10  ;;  %v354_v11 = vld [vmem:[%s1269_s2] sm:$0xf]  ;;  %766 = vmatprep.subr.mxu0 %v975_v10  ;;  %s759_s17 = sshll.u32 %s1040_s28, 7  ;;  %s332_s23 = scalar_lea.vmem [#allocation7], %s1170_s29 }
  0x5c   : > { %772 = vmatpush3.msk.msra.mxu1 %vm338_vm0, %v354_v11  ;;  %773 = vmatprep.mubr.msk.f32.mxu1 %vm976_vm1, %v975_v10  ;;  %v355_v12 = vld [vmem:[%s1270_s3] sm:$0xf]  ;;  %v358_v14 = vand.u32 127, %v357_v13  ;;  %v360_v15 = vshrl.u32 %v357_v13, 7  ;;  %vm363_vm2 = vcmask 31744   ;;  %s639_s8 = sshll.u32 %s332_s23, 4  ;;  %s1223_s19 = scalar_lea.hbm %s1274_s7, %s759_s17  ;;  %s1225_s8 = int_to_ptr.vmem [resolvable:$true] %s639_s8 }
  0x5d   : > { %v340_v5 = vsel %vm338_vm0, %v336_v2, 0.0  ;;  %v349_v7 = vsel %vm338_vm0, %v346_v4, 0.0  ;;  %768 = vmatprep.mubr.msk.f32.mxu0 %vm976_vm1, %v975_v10  ;;  %767 = vmatpush3.msk.msra.mxu0 %vm338_vm0, %v355_v12  ;;  %v522_v23 = vld [vmem:[%s1272_s5] sm:$0xf]  ;;  %v977_v42 = vmov 839922192  }
  0x5e   : > { %v341_v8 = vadd.f32 %v340_v5, %v339_v3  ;;  %v350_v9 = vadd.f32 %v349_v7, %v348_v6  ;;  %776 = vmatprep.subr.mxu0 %v975_v10  ;;  %v361_v16 = vsub.s32 %v358_v14, %v360_v15  ;;  %v519_v27 = vld [vmem:[%s1271_s4] sm:$0x1]  ;;  %v608_v39 = vsub.s32 0, %v360_v15  ;;  %s625_s20 = scalar_lea.sflag [#allocation4], %s1167_s22  ;;  %s901_s18 = scalar_lea.vmem %s1225_s8, 128 }
  0x5f   : > { %v523_v32 = vld [vmem:[%s1273_s6] sm:$0x1]  ;;  %v615_v43 = vunpack.c.l.s4 %v977_v42  ;;  %p902_p13 = scmp.ne.s32.totalorder %s1225_s8, %s901_s18  ;;  %p1291_p3 = scmp.ne.s32.totalorder %s1281_s13, 0 }
  0x60   : > { %342 = vadd.xlane.f32.xlu0 %v341_v8  ;;  %s978_s28 = smov [#allocation7]  }
  0x61   : > { %v616_v44 = vunpack.c.0.s8 %v615_v43  ;;  %p903_p7 = pnand %p902_p13, %p1291_p3  ;;  %s905_s29 = sshll.u32 %s978_s28, 4  ;;  %s906_s29 = int_to_ptr.vmem [resolvable:$false] %s905_s29 }
  0x62   : > { %s907_s15 = scalar_lea.vmem %s906_s29, 256  ;;  %p908_p8 = scmp.lt.s32.totalorder %s1225_s8, %s906_s29 }
  0x63   : > { %v619_v45 = vsub.s32 %v616_v44, %v360_v15  ;;  %p904_p5 = pneg %p903_p7  ;;  %p909_p9 = scmp.lt.s32.totalorder %s907_s15, %s901_s18 }
  0x64   : > { %351 = vadd.xlane.f32.xlu0 %v350_v9 }
  0x65   : > { %p910_p0 = por %p909_p9, %p908_p8 }
  0x67   : > { %p911_p1 = pnand %p910_p0, %p904_p5 }
  0xed   : > { %v343_v17 = vpop.xlane.xlu0 %342 }
  0xee   : > { %v344_v18 = vmul.f32 0.00390625, %v343_v17 }
  0xf0   : > { %v443_v19 = vrot.slane %v344_v18, %v361_v16 }
  0xf1   : > { %v352_v20 = vpop.xlane.xlu0 %351 }
  0xf2   : > { %v353_v21 = vmul.f32 0.00390625, %v352_v20  ;;  %774 = vmatmul.mubr.msk.f32.vlgmr.msra.gmra.mrb[0].mxu1 %vm363_vm2, %v443_v19 }
  0xf4   : > { %v362_v22 = vrot.slane %v353_v21, %v361_v16 }
  0xf6   : > { %769 = vmatmul.mubr.msk.f32.vlgmr.msra.gmra.mrb[0].mxu0 %vm363_vm2, %v362_v22 }
  0xf7   : > { %778 = vmatprep.mubr.msk.f32.mxu0 %vm976_vm1, %v975_v10  ;;  %777 = vmatpush3.msk.msra.mxu0 %vm338_vm0, %v522_v23 }
 0x1c5   : > { %v515_v24 = vpop.f32.mrb[0].mxu1 }
 0x1c6   : > { %v775_v25 = vpop.f32.mrb[1].mxu1 }
 0x1c9   : > { %v435_v26 = vpop.f32.mrb[0].mxu0 }
 0x1ca   : > { %v516_v28 = vadd.f32 %v515_v24, %v435_v26  ;;  %v770_v29 = vpop.f32.mrb[1].mxu0 }
 0x1cc   : > { %v520_v30 = vadd.f32 %v519_v27, %v516_v28 }
 0x1ce   : > { %v521_v31 = vmax.f32 %v520_v30, 0.0 }
 0x1d0   : > { %779 = vmatmul.mubr.msk.f32.vlgmr.msra.gmra.mrb[2].mxu0 %vm363_vm2, %v521_v31 }
 0x2a3   : > { %v596_v33 = vpop.f32.mrb[2].mxu0 }
 0x2a4   : > { %v597_v34 = vadd.f32 %v596_v33, %v523_v32  ;;  %v780_v35 = vpop.f32.mrb[3].mxu0 }
 0x2a6   : > { %v751_v36 = vmul.f32 -1.442695, %v597_v34 }
 0x2a8   : > { %837 = vpow2.f32 %v751_v36 }
 0x2b2   : > { %v838_v37 = vpop.eup %837 }
 0x2b3   : > { %v603_v38 = vadd.f32 1.0, %v838_v37 }
 0x2b5   : > { %839 = vrcp.f32 %v603_v38 }
 0x2bf   : > { %v840_v40 = vpop.eup %839 }
 0x2c0   : > { %v609_v41 = vrot.slane %v840_v40, %v608_v39 }
 0x2c2   : > { %611 = vbcast.lane.b32.xlu1 %v609_v41, 256 }
 0x334   : > { %v612_v46 = vpop.permute.xlu1 %611 }
 0x335   : > { %v620_v47 = vrot.slane %v612_v46, %v619_v45 }
 0x337   : > { %v622_v48 = vmul.f32 %v620_v47, %v1184_v0 }
 0x339   : > { %623 = vst [vmem:[%s332_s23] sm:$0xff] %v622_v48 }
 0x33a   : > { %914 = shalt.err (!%p911_p1)
}
 0x33b   : > { %s915_s22 = scalar_lea.hbm %s1223_s19, 128  ;;  %s919_s11 = scalar_lea.hbm %s1274_s7, 256 }
 0x33c   : > { %p916_p11 = scmp.ne.s32.totalorder %s1223_s19, %s915_s22  ;;  %p920_p4 = scmp.lt.u32.totalorder %s1223_s19, %s1274_s7 }
 0x33d   : > { %p921_p10 = scmp.lt.u32.totalorder %s919_s11, %s915_s22  ;;  %p923_p13 = scmp.lt.u32.totalorder %s915_s22, %s1223_s19 }
 0x33e   : > { %p917_p12 = pnand %p916_p11, %p1291_p3 }
 0x33f   : > { %p922_p6 = por %p921_p10, %p920_p4 }
 0x340   : > { %p918_p2 = pneg %p917_p12 }
 0x341   : > { %p924_p7 = por %p923_p13, %p922_p6 }
 0x343   : > { %p925_p5 = pnand %p924_p7, %p918_p2 }
 0x345   : > { %928 = shalt.err (!%p925_p5)
}
 0x346   : > { %785 = dma.vmem_to_hbm [thread:$0]  (%p1291_p3), %s1225_s8, 128, %s1223_s19, %s625_s20  }
 0x347 PF: > { %s651_s23 = sand.u32 1, %s959_s24   ;;  %p1292_p8 = scmp.ne.s32.totalorder %s1282_s14, 0 }
 0x348   : > { %p1293_p9 = scmp.ge.s32.totalorder %s971_s27, 2  ;;  %s652_s12 = scalar_lea.sflag [#allocation4], %s651_s23 }
 0x34a   : > { %p795_p0 = pnand %p1293_p9, %p1292_p8 }
 0x34c   : > { %954 = dma.done.wait (!%p795_p0), %s652_s12, 128  }
 0x34d   : > { %956 = vsyncadd (!%p795_p0), %s652_s12, 4294967168  ;;  %p23_p1 = scmp.ge.s32.totalorder %s1044_s30, 4   ;;  %s1294_s24 = smov %s963_s25 }
 0x34e   : > { %s1295_s25 = smov %s967_s26  ;;  %s1296_s26 = smov %s1056_s10 }
 0x34f   : > { %s1297_s27 = smov %s1044_s30  ;;  %25 = sbr.rel (!%p23_p1) target bundleno = 9 (0x9), region = 106 }
 0x356   :  { %657 = vsyncpa [#allocation3], 1 }
 0x357   :  { %659 = vsyncpa [#allocation3 + $0x1], 1 }
 0x358   :  { %660 = vsyncpa [#allocation6], 1 }
 0x359   :  { %662 = vsyncpa [#allocation6 + $0x1], 1 }
 0x35a   :  { %663 = vsyncpa [#allocation4], 1 }
 0x35b   :  { %665 = vsyncpa [#allocation4 + $0x1], 1 }

</bundles_post_ra>
